<compile_context>
chip_gen: v7x
topology: tpu7x:2x2x1
jax: 0.10.0
libtpu: 0.0.40
codegen_flags: <defaults>
</compile_context>

<pallas_src>
import functools

import jax
import jax.numpy as jnp
from jax.experimental import pallas as pl
from jax.experimental.pallas import tpu as pltpu


def _fill_slab(slab_ref, src_ref, *, C, K, Wp, M):
    """slab[t*C:(t+1)*C, :] = src[:, s_t : s_t + M], s_t = dy*Wp + dx.

    Each tap is a contiguous lane slice of the padded bf16 image (the
    misaligned lane start lowers to an XLU rotate), and each store covers
    whole sublane groups when C is a multiple of 8 — fully lane-dense.
    """
    for dy in range(K):
        for dx in range(K):
            t = dy * K + dx
            s = dy * Wp + dx
            slab_ref[t * C:(t + 1) * C, :] = src_ref[:, s:s + M]


def _resblock_kernel(x_ref, mask_ref, w1_ref, w2_ref, out_ref,
                     xbf_ref, mbf_ref, slab_ref, *, H, W, C, K, P):
    """One image per grid step.

    x_ref    : (1, C, Hp*Wp) f32  zero-padded input (wrapper-padded), flat spatial
    mask_ref : (1, H*Wp)     f32  1.0 on valid columns (x' < W), 0.0 on garbage
    w1_ref   : (C, K*K*C)    bf16 conv1 weights, cols ordered (tap, cin)
    w2_ref   : (C, K*K*C)    bf16 conv2 weights
    out_ref  : (1, C, H*Wp)  f32  extended output (wrapper slices off 2P lanes/row)
    xbf_ref, mbf_ref : VMEM (C, Hp*Wp + K) bf16  padded input / padded relu(conv1)
    slab_ref : VMEM (K*K*C, H*Wp) bf16  im2col slab (reused by both convs)
    """
    Wp = W + 2 * P
    Hp = H + 2 * P
    M = H * Wp                 # extended (padded-width) flat spatial size
    OFF = P * Wp + P           # flat offset of pixel (0,0) in the padded layout
    TOT = Hp * Wp + K          # scratch width (K slack lanes for tap over-reach)

    # Single f32 -> bf16 cast of the padded input; zero the slack lanes.
    xbf_ref[:, 0:Hp * Wp] = x_ref[0].astype(jnp.bfloat16)
    xbf_ref[:, Hp * Wp:TOT] = jnp.zeros((C, TOT - Hp * Wp), jnp.bfloat16)

    # conv1: one im2col matmul (bf16 operands, f32 accumulation on the MXU).
    _fill_slab(slab_ref, xbf_ref, C=C, K=K, Wp=Wp, M=M)
    h1 = jnp.dot(w1_ref[...], slab_ref[...],
                 preferred_element_type=jnp.float32)            # (C, M) f32

    # act = ReLU; rebuild the padded bf16 mid image.  The column mask zeroes
    # the 2P garbage lanes per row, which land exactly in the halo of the
    # padded layout, so one big lane-dense store plus two tiny span stores
    # rebuild the whole padded image every step (no cross-step scratch state).
    mid = jnp.maximum(h1, 0.0) * mask_ref[...]                  # (C, M) f32
    mbf_ref[:, 0:OFF] = jnp.zeros((C, OFF), jnp.bfloat16)
    mbf_ref[:, OFF:OFF + M] = mid.astype(jnp.bfloat16)
    mbf_ref[:, OFF + M:TOT] = jnp.zeros((C, TOT - OFF - M), jnp.bfloat16)

    # conv2: same slab scratch, same NT orientation -> result born (C, M).
    _fill_slab(slab_ref, mbf_ref, C=C, K=K, Wp=Wp, M=M)
    h2 = jnp.dot(w2_ref[...], slab_ref[...],
                 preferred_element_type=jnp.float32)            # (C, M) f32

    # Residual add straight from the f32 padded input (contiguous lane slice);
    # lane-dense store of the extended output.
    out_ref[0] = (h2 + x_ref[0, :, OFF:OFF + M]).astype(out_ref.dtype)


def resblock_forward(x_nchw, w1, w2):
    """ResBlock forward: conv2(relu(conv1(x))) + x.

    x_nchw : (N, C, H, W) float32
    w1, w2 : (K*K, C, C) float32, tap-major: w[dy*K + dx, cin, cout]
    """
    N, C, H, W = x_nchw.shape
    KK = w1.shape[0]
    K = int(round(KK ** 0.5))
    assert K * K == KK and w1.shape == (KK, C, C) and w2.shape == (KK, C, C)
    P = K // 2
    Hp, Wp = H + 2 * P, W + 2 * P
    M = H * Wp

    # Wrapper-side zero padding (single cheap XLA pad, NO transposes): the
    # kernel then only ever touches contiguous, lane-dense (C, spatial) slabs.
    x_pad = jnp.pad(x_nchw, ((0, 0), (0, 0), (P, P), (P, P))).reshape(N, C, Hp * Wp)

    # Validity mask over the extended (padded-width) output: lanes x' in
    # [W, Wp) of each row are conv garbage and must read back as halo zeros
    # when re-padding for conv2.
    col = jnp.arange(M, dtype=jnp.int32) % Wp
    mask = (col < W).astype(jnp.float32).reshape(1, M)

    # Weights as (C_out, K*K*C_in): both convs run NT so results are born
    # channel-major with spatial on the lane axis.
    w1_mat = jnp.transpose(w1, (2, 0, 1)).reshape(C, KK * C).astype(jnp.bfloat16)
    w2_mat = jnp.transpose(w2, (2, 0, 1)).reshape(C, KK * C).astype(jnp.bfloat16)

    kernel = functools.partial(_resblock_kernel, H=H, W=W, C=C, K=K, P=P)

    # VMEM budget: double-buffered in/out blocks + weights + mask + scratches,
    # with ~2x headroom (clamped to sane bounds).
    in_block = C * Hp * Wp * 4
    out_block = C * M * 4
    w_bytes = 2 * C * KK * C * 2
    scratch = 2 * C * (Hp * Wp + K) * 2 + KK * C * M * 2
    need = 2 * in_block + 2 * out_block + w_bytes + 4 * M + scratch
    vmem_limit = int(min(max(2 * need + (8 << 20), 32 << 20), 96 << 20))

    out_ext = pl.pallas_call(
        kernel,
        out_shape=jax.ShapeDtypeStruct((N, C, M), x_nchw.dtype),
        grid=(N,),
        in_specs=[
            pl.BlockSpec((1, C, Hp * Wp), lambda n: (n, 0, 0)),
            pl.BlockSpec((1, M), lambda n: (0, 0)),
            pl.BlockSpec((C, KK * C), lambda n: (0, 0)),
            pl.BlockSpec((C, KK * C), lambda n: (0, 0)),
        ],
        out_specs=pl.BlockSpec((1, C, M), lambda n: (n, 0, 0)),
        scratch_shapes=[
            pltpu.VMEM((C, Hp * Wp + K), jnp.bfloat16),   # padded input, bf16
            pltpu.VMEM((C, Hp * Wp + K), jnp.bfloat16),   # padded relu(conv1), bf16
            pltpu.VMEM((KK * C, M), jnp.bfloat16),        # im2col slab (reused)
        ],
        compiler_params=pltpu.CompilerParams(
            dimension_semantics=("parallel",),
            vmem_limit_bytes=vmem_limit),
    )(x_pad, mask, w1_mat, w2_mat)

    # Drop the 2P garbage lanes per row (cheap XLA slice), back to NCHW.
    return out_ext.reshape(N, C, H, Wp)[:, :, :, :W]


def _reference(x_nchw, w1, w2, K):
    """Pure-JAX reference (lax conv, cross-correlation like PyTorch), f32."""
    C = x_nchw.shape[1]
    x = jnp.transpose(x_nchw, (0, 2, 3, 1))
    w1_hwio = w1.reshape(K, K, C, C)
    w2_hwio = w2.reshape(K, K, C, C)
    dn = ("NHWC", "HWIO", "NHWC")
    pad = [(K // 2, K // 2), (K // 2, K // 2)]
    h = jax.lax.conv_general_dilated(x, w1_hwio, (1, 1), pad, dimension_numbers=dn)
    h = jnp.maximum(h, 0.0)
    h = jax.lax.conv_general_dilated(h, w2_hwio, (1, 1), pad, dimension_numbers=dn)
    return jnp.transpose(h + x, (0, 3, 1, 2))


if __name__ == "__main__":
    # Small shapes consistent with the module: wf channels, 3x3 conv, bias=False.
    N, wf, H, W = 2, 8, 16, 16
    K = 3

    key = jax.random.PRNGKey(0)
    kx, k1, k2 = jax.random.split(key, 3)
    x = jax.random.normal(kx, (N, wf, H, W), dtype=jnp.float32)
    # Deterministic weights, stored tap-major as (K*K, Cin, Cout).
    w1 = jax.random.normal(k1, (K * K, wf, wf), dtype=jnp.float32) * 0.1
    w2 = jax.random.normal(k2, (K * K, wf, wf), dtype=jnp.float32) * 0.1

    out = jax.block_until_ready(resblock_forward(x, w1, w2))

    ref = _reference(x, w1, w2, K)
    assert out.shape == (N, wf, H, W)
    # Loose tolerance: kernel rounds matmul operands to bf16 (f32 accumulate).
    assert jnp.allclose(out, ref, atol=3e-2, rtol=3e-2), "mismatch vs reference"

    print("KERNEL_OK")
</pallas_src>

<mosaic_0001>
module attributes {stable_mosaic.version = 11 : i64} {
  func.func @_resblock_kernel(%arg0: i32, %arg1: memref<1x8x324xf32, #tpu.memory_space<vmem>>, %arg2: memref<1x288xf32, #tpu.memory_space<vmem>>, %arg3: memref<8x72xbf16, #tpu.memory_space<vmem>>, %arg4: memref<8x72xbf16, #tpu.memory_space<vmem>>, %arg5: memref<1x8x288xf32, #tpu.memory_space<vmem>>, %arg6: memref<8x327xbf16, #tpu.memory_space<vmem>>, %arg7: memref<8x327xbf16, #tpu.memory_space<vmem>>, %arg8: memref<72x288xbf16, #tpu.memory_space<vmem>>) attributes {dimension_semantics = [#tpu.dimension_semantics<parallel>], iteration_bounds = array<i64: 2>, scalar_prefetch = 0 : i64, scratch_operands = 3 : i64, tpu.core_type = #tpu.core_type<tc>, window_params = [{transform_indices = @transform_0, window_bounds = array<i64: 1, 8, 324>}, {pipeline_mode = #tpu.pipeline_mode<synchronous>, transform_indices = @transform_1, window_bounds = array<i64: 1, 288>}, {pipeline_mode = #tpu.pipeline_mode<synchronous>, transform_indices = @transform_2, window_bounds = array<i64: 8, 72>}, {pipeline_mode = #tpu.pipeline_mode<synchronous>, transform_indices = @transform_3, window_bounds = array<i64: 8, 72>}, {transform_indices = @transform_4, window_bounds = array<i64: 1, 8, 288>}]} {
    %c0 = arith.constant 0 : index
    %c0_0 = arith.constant 0 : index
    %c0_1 = arith.constant 0 : index
    %0 = vector.load %arg1[%c0, %c0_0, %c0_1] : memref<1x8x324xf32, #tpu.memory_space<vmem>>, vector<1x8x324xf32>
    %1 = vector.shape_cast %0 : vector<1x8x324xf32> to vector<8x324xf32>
    %2 = arith.truncf %1 : vector<8x324xf32> to vector<8x324xbf16>
    %c0_2 = arith.constant 0 : index
    %c0_3 = arith.constant 0 : index
    %3 = vector.load %arg6[%c0_2, %c0_3] : memref<8x327xbf16, #tpu.memory_space<vmem>>, vector<8x324xbf16>
    tpu.vector_store %arg6[%c0_2, %c0_3], %2 {strides = array<i32>} : memref<8x327xbf16, #tpu.memory_space<vmem>>, vector<8x324xbf16>,
    %cst = arith.constant 0.000000e+00 : bf16
    %4 = vector.broadcast %cst : bf16 to vector<8x3xbf16>
    %c0_4 = arith.constant 0 : index
    %c324 = arith.constant 324 : index
    %5 = vector.load %arg6[%c0_4, %c324] : memref<8x327xbf16, #tpu.memory_space<vmem>>, vector<8x3xbf16>
    tpu.vector_store %arg6[%c0_4, %c324], %4 {strides = array<i32>} : memref<8x327xbf16, #tpu.memory_space<vmem>>, vector<8x3xbf16>,
    %c0_5 = arith.constant 0 : index
    %c0_6 = arith.constant 0 : index
    %6 = vector.load %arg6[%c0_5, %c0_6] : memref<8x327xbf16, #tpu.memory_space<vmem>>, vector<8x288xbf16>
    %c0_7 = arith.constant 0 : index
    %c0_8 = arith.constant 0 : index
    %7 = vector.load %arg8[%c0_7, %c0_8] : memref<72x288xbf16, #tpu.memory_space<vmem>>, vector<8x288xbf16>
    tpu.vector_store %arg8[%c0_7, %c0_8], %6 {strides = array<i32>} : memref<72x288xbf16, #tpu.memory_space<vmem>>, vector<8x288xbf16>,
    %c0_9 = arith.constant 0 : index
    %c1 = arith.constant 1 : index
    %8 = vector.load %arg6[%c0_9, %c1] : memref<8x327xbf16, #tpu.memory_space<vmem>>, vector<8x288xbf16>
    %c8 = arith.constant 8 : index
    %c0_10 = arith.constant 0 : index
    %9 = vector.load %arg8[%c8, %c0_10] : memref<72x288xbf16, #tpu.memory_space<vmem>>, vector<8x288xbf16>
    tpu.vector_store %arg8[%c8, %c0_10], %8 {strides = array<i32>} : memref<72x288xbf16, #tpu.memory_space<vmem>>, vector<8x288xbf16>,
    %c0_11 = arith.constant 0 : index
    %c2 = arith.constant 2 : index
    %10 = vector.load %arg6[%c0_11, %c2] : memref<8x327xbf16, #tpu.memory_space<vmem>>, vector<8x288xbf16>
    %c16 = arith.constant 16 : index
    %c0_12 = arith.constant 0 : index
    %11 = vector.load %arg8[%c16, %c0_12] : memref<72x288xbf16, #tpu.memory_space<vmem>>, vector<8x288xbf16>
    tpu.vector_store %arg8[%c16, %c0_12], %10 {strides = array<i32>} : memref<72x288xbf16, #tpu.memory_space<vmem>>, vector<8x288xbf16>,
    %c0_13 = arith.constant 0 : index
    %c18 = arith.constant 18 : index
    %12 = vector.load %arg6[%c0_13, %c18] : memref<8x327xbf16, #tpu.memory_space<vmem>>, vector<8x288xbf16>
    %c24 = arith.constant 24 : index
    %c0_14 = arith.constant 0 : index
    %13 = vector.load %arg8[%c24, %c0_14] : memref<72x288xbf16, #tpu.memory_space<vmem>>, vector<8x288xbf16>
    tpu.vector_store %arg8[%c24, %c0_14], %12 {strides = array<i32>} : memref<72x288xbf16, #tpu.memory_space<vmem>>, vector<8x288xbf16>,
    %c0_15 = arith.constant 0 : index
    %c19 = arith.constant 19 : index
    %14 = vector.load %arg6[%c0_15, %c19] : memref<8x327xbf16, #tpu.memory_space<vmem>>, vector<8x288xbf16>
    %c32 = arith.constant 32 : index
    %c0_16 = arith.constant 0 : index
    %15 = vector.load %arg8[%c32, %c0_16] : memref<72x288xbf16, #tpu.memory_space<vmem>>, vector<8x288xbf16>
    tpu.vector_store %arg8[%c32, %c0_16], %14 {strides = array<i32>} : memref<72x288xbf16, #tpu.memory_space<vmem>>, vector<8x288xbf16>,
    %c0_17 = arith.constant 0 : index
    %c20 = arith.constant 20 : index
    %16 = vector.load %arg6[%c0_17, %c20] : memref<8x327xbf16, #tpu.memory_space<vmem>>, vector<8x288xbf16>
    %c40 = arith.constant 40 : index
    %c0_18 = arith.constant 0 : index
    %17 = vector.load %arg8[%c40, %c0_18] : memref<72x288xbf16, #tpu.memory_space<vmem>>, vector<8x288xbf16>
    tpu.vector_store %arg8[%c40, %c0_18], %16 {strides = array<i32>} : memref<72x288xbf16, #tpu.memory_space<vmem>>, vector<8x288xbf16>,
    %c0_19 = arith.constant 0 : index
    %c36 = arith.constant 36 : index
    %18 = vector.load %arg6[%c0_19, %c36] : memref<8x327xbf16, #tpu.memory_space<vmem>>, vector<8x288xbf16>
    %c48 = arith.constant 48 : index
    %c0_20 = arith.constant 0 : index
    %19 = vector.load %arg8[%c48, %c0_20] : memref<72x288xbf16, #tpu.memory_space<vmem>>, vector<8x288xbf16>
    tpu.vector_store %arg8[%c48, %c0_20], %18 {strides = array<i32>} : memref<72x288xbf16, #tpu.memory_space<vmem>>, vector<8x288xbf16>,
    %c0_21 = arith.constant 0 : index
    %c37 = arith.constant 37 : index
    %20 = vector.load %arg6[%c0_21, %c37] : memref<8x327xbf16, #tpu.memory_space<vmem>>, vector<8x288xbf16>
    %c56 = arith.constant 56 : index
    %c0_22 = arith.constant 0 : index
    %21 = vector.load %arg8[%c56, %c0_22] : memref<72x288xbf16, #tpu.memory_space<vmem>>, vector<8x288xbf16>
    tpu.vector_store %arg8[%c56, %c0_22], %20 {strides = array<i32>} : memref<72x288xbf16, #tpu.memory_space<vmem>>, vector<8x288xbf16>,
    %c0_23 = arith.constant 0 : index
    %c38 = arith.constant 38 : index
    %22 = vector.load %arg6[%c0_23, %c38] : memref<8x327xbf16, #tpu.memory_space<vmem>>, vector<8x288xbf16>
    %c64 = arith.constant 64 : index
    %c0_24 = arith.constant 0 : index
    %23 = vector.load %arg8[%c64, %c0_24] : memref<72x288xbf16, #tpu.memory_space<vmem>>, vector<8x288xbf16>
    tpu.vector_store %arg8[%c64, %c0_24], %22 {strides = array<i32>} : memref<72x288xbf16, #tpu.memory_space<vmem>>, vector<8x288xbf16>,
    %c0_25 = arith.constant 0 : index
    %c0_26 = arith.constant 0 : index
    %24 = vector.load %arg3[%c0_25, %c0_26] : memref<8x72xbf16, #tpu.memory_space<vmem>>, vector<8x72xbf16>
    %c0_27 = arith.constant 0 : index
    %c0_28 = arith.constant 0 : index
    %25 = vector.load %arg8[%c0_27, %c0_28] : memref<72x288xbf16, #tpu.memory_space<vmem>>, vector<72x288xbf16>
    %cst_29 = arith.constant dense<0.000000e+00> : vector<8x288xf32>
    %26 = tpu.matmul %24, %25, %cst_29 {dimension_numbers = #tpu.dot_dimension_numbers<[1], [0], [0], [1], [0, 0, 1, 1], [], []>} : vector<8x72xbf16>, vector<72x288xbf16>, vector<8x288xf32> -> vector<8x288xf32>
    %cst_30 = arith.constant 0.000000e+00 : f32
    %27 = vector.broadcast %cst_30 : f32 to vector<8x288xf32>
    %28 = arith.maximumf %26, %27 : vector<8x288xf32>
    %c0_31 = arith.constant 0 : index
    %c0_32 = arith.constant 0 : index
    %29 = vector.load %arg2[%c0_31, %c0_32] : memref<1x288xf32, #tpu.memory_space<vmem>>, vector<1x288xf32>
    %30 = vector.broadcast %29 : vector<1x288xf32> to vector<8x288xf32>
    %31 = arith.mulf %28, %30 : vector<8x288xf32>
    %cst_33 = arith.constant 0.000000e+00 : bf16
    %32 = vector.broadcast %cst_33 : bf16 to vector<8x19xbf16>
    %c0_34 = arith.constant 0 : index
    %c0_35 = arith.constant 0 : index
    %33 = vector.load %arg7[%c0_34, %c0_35] : memref<8x327xbf16, #tpu.memory_space<vmem>>, vector<8x19xbf16>
    tpu.vector_store %arg7[%c0_34, %c0_35], %32 {strides = array<i32>} : memref<8x327xbf16, #tpu.memory_space<vmem>>, vector<8x19xbf16>,
    %34 = arith.truncf %31 : vector<8x288xf32> to vector<8x288xbf16>
    %c0_36 = arith.constant 0 : index
    %c19_37 = arith.constant 19 : index
    %35 = vector.load %arg7[%c0_36, %c19_37] : memref<8x327xbf16, #tpu.memory_space<vmem>>, vector<8x288xbf16>
    tpu.vector_store %arg7[%c0_36, %c19_37], %34 {strides = array<i32>} : memref<8x327xbf16, #tpu.memory_space<vmem>>, vector<8x288xbf16>,
    %cst_38 = arith.constant 0.000000e+00 : bf16
    %36 = vector.broadcast %cst_38 : bf16 to vector<8x20xbf16>
    %c0_39 = arith.constant 0 : index
    %c307 = arith.constant 307 : index
    %37 = vector.load %arg7[%c0_39, %c307] : memref<8x327xbf16, #tpu.memory_space<vmem>>, vector<8x20xbf16>
    tpu.vector_store %arg7[%c0_39, %c307], %36 {strides = array<i32>} : memref<8x327xbf16, #tpu.memory_space<vmem>>, vector<8x20xbf16>,
    %c0_40 = arith.constant 0 : index
    %c0_41 = arith.constant 0 : index
    %38 = vector.load %arg7[%c0_40, %c0_41] : memref<8x327xbf16, #tpu.memory_space<vmem>>, vector<8x288xbf16>
    %c0_42 = arith.constant 0 : index
    %c0_43 = arith.constant 0 : index
    %39 = vector.load %arg8[%c0_42, %c0_43] : memref<72x288xbf16, #tpu.memory_space<vmem>>, vector<8x288xbf16>
    tpu.vector_store %arg8[%c0_42, %c0_43], %38 {strides = array<i32>} : memref<72x288xbf16, #tpu.memory_space<vmem>>, vector<8x288xbf16>,
    %c0_44 = arith.constant 0 : index
    %c1_45 = arith.constant 1 : index
    %40 = vector.load %arg7[%c0_44, %c1_45] : memref<8x327xbf16, #tpu.memory_space<vmem>>, vector<8x288xbf16>
    %c8_46 = arith.constant 8 : index
    %c0_47 = arith.constant 0 : index
    %41 = vector.load %arg8[%c8_46, %c0_47] : memref<72x288xbf16, #tpu.memory_space<vmem>>, vector<8x288xbf16>
    tpu.vector_store %arg8[%c8_46, %c0_47], %40 {strides = array<i32>} : memref<72x288xbf16, #tpu.memory_space<vmem>>, vector<8x288xbf16>,
    %c0_48 = arith.constant 0 : index
    %c2_49 = arith.constant 2 : index
    %42 = vector.load %arg7[%c0_48, %c2_49] : memref<8x327xbf16, #tpu.memory_space<vmem>>, vector<8x288xbf16>
    %c16_50 = arith.constant 16 : index
    %c0_51 = arith.constant 0 : index
    %43 = vector.load %arg8[%c16_50, %c0_51] : memref<72x288xbf16, #tpu.memory_space<vmem>>, vector<8x288xbf16>
    tpu.vector_store %arg8[%c16_50, %c0_51], %42 {strides = array<i32>} : memref<72x288xbf16, #tpu.memory_space<vmem>>, vector<8x288xbf16>,
    %c0_52 = arith.constant 0 : index
    %c18_53 = arith.constant 18 : index
    %44 = vector.load %arg7[%c0_52, %c18_53] : memref<8x327xbf16, #tpu.memory_space<vmem>>, vector<8x288xbf16>
    %c24_54 = arith.constant 24 : index
    %c0_55 = arith.constant 0 : index
    %45 = vector.load %arg8[%c24_54, %c0_55] : memref<72x288xbf16, #tpu.memory_space<vmem>>, vector<8x288xbf16>
    tpu.vector_store %arg8[%c24_54, %c0_55], %44 {strides = array<i32>} : memref<72x288xbf16, #tpu.memory_space<vmem>>, vector<8x288xbf16>,
    %c0_56 = arith.constant 0 : index
    %c19_57 = arith.constant 19 : index
    %46 = vector.load %arg7[%c0_56, %c19_57] : memref<8x327xbf16, #tpu.memory_space<vmem>>, vector<8x288xbf16>
    %c32_58 = arith.constant 32 : index
    %c0_59 = arith.constant 0 : index
    %47 = vector.load %arg8[%c32_58, %c0_59] : memref<72x288xbf16, #tpu.memory_space<vmem>>, vector<8x288xbf16>
    tpu.vector_store %arg8[%c32_58, %c0_59], %46 {strides = array<i32>} : memref<72x288xbf16, #tpu.memory_space<vmem>>, vector<8x288xbf16>,
    %c0_60 = arith.constant 0 : index
    %c20_61 = arith.constant 20 : index
    %48 = vector.load %arg7[%c0_60, %c20_61] : memref<8x327xbf16, #tpu.memory_space<vmem>>, vector<8x288xbf16>
    %c40_62 = arith.constant 40 : index
    %c0_63 = arith.constant 0 : index
    %49 = vector.load %arg8[%c40_62, %c0_63] : memref<72x288xbf16, #tpu.memory_space<vmem>>, vector<8x288xbf16>
    tpu.vector_store %arg8[%c40_62, %c0_63], %48 {strides = array<i32>} : memref<72x288xbf16, #tpu.memory_space<vmem>>, vector<8x288xbf16>,
    %c0_64 = arith.constant 0 : index
    %c36_65 = arith.constant 36 : index
    %50 = vector.load %arg7[%c0_64, %c36_65] : memref<8x327xbf16, #tpu.memory_space<vmem>>, vector<8x288xbf16>
    %c48_66 = arith.constant 48 : index
    %c0_67 = arith.constant 0 : index
    %51 = vector.load %arg8[%c48_66, %c0_67] : memref<72x288xbf16, #tpu.memory_space<vmem>>, vector<8x288xbf16>
    tpu.vector_store %arg8[%c48_66, %c0_67], %50 {strides = array<i32>} : memref<72x288xbf16, #tpu.memory_space<vmem>>, vector<8x288xbf16>,
    %c0_68 = arith.constant 0 : index
    %c37_69 = arith.constant 37 : index
    %52 = vector.load %arg7[%c0_68, %c37_69] : memref<8x327xbf16, #tpu.memory_space<vmem>>, vector<8x288xbf16>
    %c56_70 = arith.constant 56 : index
    %c0_71 = arith.constant 0 : index
    %53 = vector.load %arg8[%c56_70, %c0_71] : memref<72x288xbf16, #tpu.memory_space<vmem>>, vector<8x288xbf16>
    tpu.vector_store %arg8[%c56_70, %c0_71], %52 {strides = array<i32>} : memref<72x288xbf16, #tpu.memory_space<vmem>>, vector<8x288xbf16>,
    %c0_72 = arith.constant 0 : index
    %c38_73 = arith.constant 38 : index
    %54 = vector.load %arg7[%c0_72, %c38_73] : memref<8x327xbf16, #tpu.memory_space<vmem>>, vector<8x288xbf16>
    %c64_74 = arith.constant 64 : index
    %c0_75 = arith.constant 0 : index
    %55 = vector.load %arg8[%c64_74, %c0_75] : memref<72x288xbf16, #tpu.memory_space<vmem>>, vector<8x288xbf16>
    tpu.vector_store %arg8[%c64_74, %c0_75], %54 {strides = array<i32>} : memref<72x288xbf16, #tpu.memory_space<vmem>>, vector<8x288xbf16>,
    %c0_76 = arith.constant 0 : index
    %c0_77 = arith.constant 0 : index
    %56 = vector.load %arg4[%c0_76, %c0_77] : memref<8x72xbf16, #tpu.memory_space<vmem>>, vector<8x72xbf16>
    %c0_78 = arith.constant 0 : index
    %c0_79 = arith.constant 0 : index
    %57 = vector.load %arg8[%c0_78, %c0_79] : memref<72x288xbf16, #tpu.memory_space<vmem>>, vector<72x288xbf16>
    %cst_80 = arith.constant dense<0.000000e+00> : vector<8x288xf32>
    %58 = tpu.matmul %56, %57, %cst_80 {dimension_numbers = #tpu.dot_dimension_numbers<[1], [0], [0], [1], [0, 0, 1, 1], [], []>} : vector<8x72xbf16>, vector<72x288xbf16>, vector<8x288xf32> -> vector<8x288xf32>
    %c0_81 = arith.constant 0 : index
    %c0_82 = arith.constant 0 : index
    %c19_83 = arith.constant 19 : index
    %59 = vector.load %arg1[%c0_81, %c0_82, %c19_83] : memref<1x8x324xf32, #tpu.memory_space<vmem>>, vector<1x8x288xf32>
    %60 = vector.shape_cast %59 : vector<1x8x288xf32> to vector<8x288xf32>
    %61 = arith.addf %58, %60 : vector<8x288xf32>
    %c0_84 = arith.constant 0 : index
    %c0_85 = arith.constant 0 : index
    %c0_86 = arith.constant 0 : index
    %62 = vector.load %arg5[%c0_84, %c0_85, %c0_86] : memref<1x8x288xf32, #tpu.memory_space<vmem>>, vector<1x8x288xf32>
    %63 = vector.shape_cast %62 : vector<1x8x288xf32> to vector<8x288xf32>
    %64 = vector.shape_cast %61 : vector<8x288xf32> to vector<1x8x288xf32>
    tpu.vector_store %arg5[%c0_84, %c0_85, %c0_86], %64 {strides = array<i32>} : memref<1x8x288xf32, #tpu.memory_space<vmem>>, vector<1x8x288xf32>,
    return
  }
  func.func @transform_0(%arg0: i32) -> (i32, i32, i32) {
    %c0_i32 = arith.constant 0 : i32
    %c0_i32_0 = arith.constant 0 : i32
    %c0_i32_1 = arith.constant 0 : i32
    return %arg0, %c0_i32, %c0_i32_0 : i32, i32, i32
  }
  func.func @transform_1(%arg0: i32) -> (i32, i32) {
    %c0_i32 = arith.constant 0 : i32
    %c0_i32_0 = arith.constant 0 : i32
    %c0_i32_1 = arith.constant 0 : i32
    return %c0_i32, %c0_i32_0 : i32, i32
  }
  func.func @transform_2(%arg0: i32) -> (i32, i32) {
    %c0_i32 = arith.constant 0 : i32
    %c0_i32_0 = arith.constant 0 : i32
    %c0_i32_1 = arith.constant 0 : i32
    return %c0_i32, %c0_i32_0 : i32, i32
  }
  func.func @transform_3(%arg0: i32) -> (i32, i32) {
    %c0_i32 = arith.constant 0 : i32
    %c0_i32_0 = arith.constant 0 : i32
    %c0_i32_1 = arith.constant 0 : i32
    return %c0_i32, %c0_i32_0 : i32, i32
  }
  func.func @transform_4(%arg0: i32) -> (i32, i32, i32) {
    %c0_i32 = arith.constant 0 : i32
    %c0_i32_0 = arith.constant 0 : i32
    %c0_i32_1 = arith.constant 0 : i32
    return %arg0, %c0_i32, %c0_i32_0 : i32, i32, i32
  }
}

</mosaic_0001>

<bundles_post_ra>
// kernel: tpu_custom_call.1
= control target key start
LH: loop header
LB: loop body
LE: loop exit
PB: predicated region body
PF: predicated region fallthrough
CT: control target
= control target key end

     0   :  { %9 = vsyncpa [#allocation6], 0  ;;  %s1651_s0 = inlined_call_operand.hbm [shape: f32[2,8,324], index: 0, kind: input, shape index: {}]   ;;  %s1652_s1 = inlined_call_operand.vmem [shape: f32[1,288], index: 1, kind: input, shape index: {}]   ;;  %s1653_s2 = inlined_call_operand.vmem [shape: bf16[8,72], index: 2, kind: input, shape index: {}]   ;;  %s1654_s3 = inlined_call_operand.vmem [shape: bf16[8,72], index: 3, kind: input, shape index: {}]   ;;  %s1655_s4 = inlined_call_operand.hbm [shape: f32[2,8,288], index: 4, kind: output, shape index: {}]  }
   0x1   :  { %11 = vsyncpa [#allocation6 + $0x1], 0 }
   0x2   :  { %12 = vsyncpa [#allocation7], 0 }
   0x3   :  { %14 = vsyncpa [#allocation7 + $0x1], 0  ;;  %s1342_s15 = smov 0   ;;  %s1344_s16 = smov 0  }
   0x4   :  { %s1346_s17 = smov 0   ;;  %s1348_s18 = smov 0  }
   0x5 LB: > { %s1363_s19 = sadd.s32 4294967295, %s1301_s18   ;;  %s1041_s20 = sadd.s32 4294967294, %s1301_s18   ;;  %s1301_s18 = sphi %s1348_s18, %s1672_s18   ;;  %s1297_s17 = sphi %s1346_s17, %s1671_s17   ;;  %s1293_s16 = sphi %s1344_s16, %s1670_s16   ;;  %s1289_s15 = sphi %s1342_s15, %s1669_s15  }
   0x6   : > { %s1367_s21 = sadd.s32 1, %s1301_s18   ;;  %s27_s22 = sadd.s32 1, %s1297_s17 }
   0x7   : > { %s24_s23 = ssub.s32 %s1301_s18, %s1367_s21  ;;  %p34_p0 = scmp.ne.s32.totalorder %s1297_s17, %s1293_s16 }
   0x8   : > { %p25_p1 = scmp.eq.s32.totalorder %s24_s23, 0  ;;  %p35_p2 = scmp.eq.s32.totalorder %s1301_s18, 0 }
   0x9   : > { %p40_p3 = scmp.ne.s32.totalorder %s1293_s16, %s1289_s15  ;;  %p41_p4 = scmp.eq.s32.totalorder %s1363_s19, 0 }
   0xa   : > { %s1379_s24 = scalar_select %p25_p1, %s1297_s17, %s27_s22  }
   0xb   : > { %p36_p5 = por %p35_p2, %p34_p0  ;;  %p1381_p6 = por %p41_p4, %p40_p3 }
   0xc   : > { %p127_p7 = scmp.eq.s32.totalorder %s1363_s19, 1  ;;  %p133_p8 = scmp.eq.s32.totalorder %s1041_s20, 1 }
   0xd   : > { %p1149_p10 = scmp.lt.s32.totalorder %s1301_s18, 2  ;;  %s162_s28 = sand.u32 1, %s1297_s17  }
   0xe   : > { %p1388_p11 = por %p127_p7, %p34_p0  ;;  %p1392_p12 = por %p133_p8, %p40_p3 }
   0xf   : > { %s1134_s29 = smul.u32 384, %s1301_s18  ;;  %p1403_p13 = pnand %p1149_p10, %p36_p5 }
  0x10   : > { %s1659_s26 = scalar_select %p1388_p11, 1, 0 }
  0x11   : > { %s1660_s27 = scalar_select %p1392_p12, 1, 0 }
  0x12   : > { %s1133_s30 = smul.u32 24, %s162_s28  ;;  %s1401_s7 = scalar_lea.hbm %s1651_s0, %s1134_s29 }
  0x13   : > { %s163_s11 = scalar_lea.sflag [#allocation6], %s162_s28  ;;  %s1205_s12 = scalar_lea.hbm %s1401_s7, 384 }
  0x14   : > { %s166_s9 = scalar_lea.vmem [#allocation5], %s1133_s30  ;;  %p1206_p2 = scmp.ne.s32.totalorder %s1401_s7, %s1205_s12 }
  0x15   : > { %s174_s10 = sshll.u32 %s166_s9, 4  ;;  %p1207_p3 = pneg %p1403_p13  ;;  %s1408_s10 = int_to_ptr.vmem [resolvable:$true] %s174_s10 }
  0x16   : > { %s1210_s20 = scalar_lea.hbm %s1651_s0, 768  ;;  %p1211_p7 = scmp.lt.u32.totalorder %s1401_s7, %s1651_s0 }
  0x17   : > { %p1208_p4 = pnand %p1207_p3, %p1206_p2  ;;  %p1212_p8 = scmp.lt.u32.totalorder %s1210_s20, %s1205_s12 }
  0x18   : > { %p1214_p9 = scmp.lt.u32.totalorder %s1205_s12, %s1401_s7 }
  0x19   : > { %p1209_p5 = pneg %p1208_p4  ;;  %p1213_p10 = por %p1212_p8, %p1211_p7 }
  0x1b   : > { %p1215_p0 = por %p1214_p9, %p1213_p10 }
  0x1d   : > { %p1216_p1 = pnand %p1215_p0, %p1209_p5 }
  0x1f   : > { %1219 = shalt.err (!%p1216_p1)
}
  0x20   : > { %s1220_s28 = scalar_lea.vmem %s1408_s10, 384  ;;  %s1303_s29 = smov [#allocation5]  }
  0x21   : > { %p1221_p2 = scmp.ne.s32.totalorder %s1408_s10, %s1220_s28  ;;  %s1225_s30 = sshll.u32 %s1303_s29, 4  ;;  %s1226_s30 = int_to_ptr.vmem [resolvable:$false] %s1225_s30 }
  0x22   : > { %s1227_s5 = scalar_lea.vmem %s1226_s30, 768  ;;  %p1228_p11 = scmp.lt.s32.totalorder %s1408_s10, %s1226_s30 }
  0x23   : > { %p1223_p4 = pnand %p1221_p2, %p1207_p3  ;;  %p1229_p7 = scmp.lt.s32.totalorder %s1227_s5, %s1220_s28 }
  0x25   : > { %p1224_p12 = pneg %p1223_p4  ;;  %p1230_p8 = por %p1229_p7, %p1228_p11 }
  0x27   : > { %p1231_p9 = pnand %p1230_p8, %p1224_p12 }
  0x29   : > { %1234 = shalt.err (!%p1231_p9)
}
  0x2a   : > { %1144 = dma.hbm_to_vmem [thread:$0]  (!%p1403_p13), %s1401_s7, 384, %s1408_s10, %s163_s11  }
  0x2b   : > { %p1662_p0 = scmp.lt.s32.totalorder %s1301_s18, 3  ;;  %p1663_p1 = scmp.ge.s32.totalorder %s1301_s18, 1 }
  0x2d   : > { %p180_p3 = pnand %p1663_p1, %p1662_p0 }
  0x2e   : > { %s1441_s6 = sand.u32 (!%p180_p3), 1, %s1293_s16  }
  0x2f   : > { %183 = sbr.rel (%p180_p3) target bundleno = 948 (0x3b4), region = 36  ;;  %s186_s12 = scalar_lea.sflag (!%p180_p3), [#allocation6], %s1441_s6 }
  0x30   : > { %s1135_s9 = smul.u32 (!%p180_p3), 24, %s1441_s6 }
  0x32   : > { %s189_s8 = scalar_lea.vmem (!%p180_p3), [#allocation5], %s1135_s9 }
  0x36   : > { %1280 = dma.done.wait (%p1381_p6), %s186_s12, 384  }
  0x37   : > { %1282 = vsyncadd (%p1381_p6), %s186_s12, 4294966912  ;;  %v1304_v0 = vmov 0   ;;  %v1452_v1 = vld [vmem:[%s189_s8] sm:$0xff]  ;;  %v1454_v2 = vld [vmem:[%s189_s8 + $0x8] sm:$0xff]  ;;  %vm232_vm0 = vcmask 551936   ;;  %vm234_vm1 = vcmask 577056  }
  0x38   : > { %515 = vmatprep.mubr.bf16.mxu0 %v1304_v0  ;;  %v1456_v3 = vld [vmem:[%s189_s8 + $0x10] sm:$0xff]  ;;  %v1460_v4 = vpack.c.bf16 %v1454_v2, %v1452_v1  ;;  %s1305_s25 = smov 126   ;;  %s1306_s7 = smov 127   ;;  %v1308_v6 = vmov 0.0   ;;  %vm239_vm2 = vcmask 257024   ;;  %vm1314_vm3 = vmmov 0  }
  0x39   : > { %v1090_v5 = vpack.c.bf16 %v1456_v3, %v1456_v3  ;;  %s1307_s10 = smov 110   ;;  %1105 = vmatprep.subr.bf16.mxu1 %v1308_v6  ;;  %s1309_s11 = smov 109   ;;  %1115 = vmatprep.mubr.msk.bf16.mxu1 %vm1314_vm3, %v1308_v6  ;;  %vm251_vm4 = vcmask 1043456   ;;  %vm270_vm5 = vcmask 1031168   ;;  %vm253_vm6 = vcmask 1039360  }
  0x3a   : > { %263 = vrot.lane.b32.xlu1 %v1460_v4, %s1305_s25  ;;  %245 = vrot.lane.b32.xlu0 %v1460_v4, %s1306_s7  ;;  %s1310_s13 = smov 108   ;;  %s1311_s14 = smov 92   ;;  %vm287_vm7 = vcmask 900096   ;;  %vm304_vm8 = vcmask 891904   ;;  %vm321_vm9 = vcmask 883712   ;;  %vm338_vm10 = vcmask 752640  }
  0x3b   : > { %233 = vst.msk [vmem:[#allocation2 + $0x8] sm:$0xf] %vm232_vm0, %v1090_v5  ;;  %s1312_s20 = smov 91   ;;  %s1313_s22 = smov 90   ;;  %vm355_vm11 = vcmask 744448   ;;  %vm372_vm12 = vcmask 736256  }
  0x3c   : > { %235 = vst.msk [vmem:[#allocation2 + $0x8] sm:$0xf] %vm234_vm1, %v1304_v0  ;;  %vm1657_vm13 = vcmask 588800   ;;  %vm587_vm14 = vcmask 150528   ;;  %s1315_s5 = smov 19   ;;  %vm610_vm15 = vcmask 1043608  }
  0x3d   : > { %588 = vst.msk [vmem:[#allocation3] sm:$0xf] %vm587_vm14, %v1304_v0  ;;  %vm611_vm0 = vcmask 1047556   ;;  %vm605_vm1 = vcmask 154624   ;;  %vm614_vm14 = vcmask 412672   ;;  %p1666_p11 = scmp.ne.s32.totalorder %s1659_s26, 0 }
  0x3e   : > { %280 = vrot.lane.b32.xlu0 %v1460_v4, %s1307_s10 }
  0x42   : > { %297 = vrot.lane.b32.xlu0 %v1460_v4, %s1309_s11 }
  0x43   : > { %v260_v7 = vld [vmem:[#allocation2 + $0x8] sm:$0xf] }
  0x44   : > { %265 = vrot.lane.b32.xlu1 %v260_v7, %s1305_s25  ;;  %v242_v8 = vld [vmem:[#allocation2 + $0x8] sm:$0xf] }
  0x45   : > { %v277_v9 = vld [vmem:[#allocation2 + $0x8] sm:$0xf] }
  0x46   : > { %v237_v10 = vld [vmem:[#allocation2 + $0x8] sm:$0xf]  ;;  %247 = vrot.lane.b32.xlu0 %v242_v8, %s1306_s7 }
  0x47   : > { %240 = vst.msk [vmem:[#allocation4 + $0x8] sm:$0xf] %vm239_vm2, %v237_v10  ;;  %v294_v11 = vld [vmem:[#allocation2 + $0x8] sm:$0xf] }
  0x48   : > { %282 = vrot.lane.b32.xlu1 %v277_v9, %s1307_s10  ;;  %v311_v12 = vld [vmem:[#allocation2 + $0x8] sm:$0xf] }
  0x49   : > { %v328_v13 = vld [vmem:[#allocation2 + $0x8] sm:$0xf] }
  0x4a   : > { %314 = vrot.lane.b32.xlu0 %v1460_v4, %s1310_s13  ;;  %v345_v14 = vld [vmem:[#allocation2 + $0x8] sm:$0xf] }
  0x4b   : > { %v362_v15 = vld [vmem:[#allocation2 + $0x8] sm:$0xf] }
  0x4c   : > { %299 = vrot.lane.b32.xlu1 %v294_v11, %s1309_s11 }
  0x4e   : > { %331 = vrot.lane.b32.xlu0 %v1460_v4, %s1311_s14 }
  0x50   : > { %316 = vrot.lane.b32.xlu1 %v311_v12, %s1310_s13 }
  0x52   : > { %348 = vrot.lane.b32.xlu0 %v1460_v4, %s1312_s20 }
  0x54   : > { %333 = vrot.lane.b32.xlu1 %v328_v13, %s1311_s14 }
  0x56   : > { %365 = vrot.lane.b32.xlu0 %v1460_v4, %s1313_s22 }
  0x58   : > { %350 = vrot.lane.b32.xlu1 %v345_v14, %s1312_s20 }
  0x5c   : > { %367 = vrot.lane.b32.xlu1 %v362_v15, %s1313_s22 }
  0xac   : > { %v246_v16 = vpop.permute.xlu0 %245  ;;  %v264_v17 = vpop.permute.xlu1 %263 }
  0xad   : > { %v267_v22 = vrot.slane %v264_v17, 4  ;;  %v249_v24 = vrot.slane %v246_v16, 4 }
  0xb0   : > { %v281_v18 = vpop.permute.xlu0 %280 }
  0xb1   : > { %v284_v28 = vrot.slane %v281_v18, 4 }
  0xb4   : > { %v298_v19 = vpop.permute.xlu0 %297 }
  0xb5   : > { %v301_v41 = vrot.slane %v298_v19, 4 }
  0xb6   : > { %v266_v20 = vpop.permute.xlu1 %265 }
  0xb7   : > { %v268_v21 = vrot.slane %v266_v20, 4  ;;  %275 = vst.msk [vmem:[#allocation4 + $0x20] sm:$0xf] %vm239_vm2, %v266_v20  ;;  %v378_v20 = vld [vmem:[%s1653_s2] sm:$0xf] }
  0xb8   : > { %v248_v23 = vpop.permute.xlu0 %247 }
  0xb9   : > { %v250_v26 = vrot.slane %v248_v23, 4  ;;  %258 = vst.msk [vmem:[#allocation4 + $0x14] sm:$0xf] %vm239_vm2, %v248_v23  ;;  %v269_v27 = vsel %vm251_vm4, %v267_v22, %v268_v21  ;;  %v569_v23 = vlaneseq }
  0xba   : > { %v283_v25 = vpop.permute.xlu1 %282  ;;  %v271_v34 = vsel %vm270_vm5, %v264_v17, %v269_v27 }
  0xbb   : > { %v285_v29 = vrot.slane %v283_v25, 4  ;;  %292 = vst.msk [vmem:[#allocation4 + $0x2c] sm:$0xf] %vm239_vm2, %v283_v25  ;;  %v252_v30 = vsel %vm251_vm4, %v249_v24, %v250_v26  ;;  %v570_v24 = vshrl.u32 %v569_v23, 7  ;;  %v567_v26 = vld [vmem:[%s1652_s1] sm:$0x7] }
  0xbc   : > { %v254_v32 = vsel %vm253_vm6, %v246_v16, %v252_v30  ;;  %v315_v33 = vpop.permute.xlu0 %314 }
  0xbd   : > { %v286_v31 = vsel %vm251_vm4, %v284_v28, %v285_v29  ;;  %v1049_v37 = vcombine.high %v1460_v4, %v254_v32  ;;  %v1048_v38 = vcombine.low %v1460_v4, %v254_v32  ;;  %v318_v42 = vrot.slane %v315_v33, 4 }
  0xbe   : > { %v288_v35 = vsel %vm287_vm7, %v281_v18, %v286_v31  ;;  %v300_v36 = vpop.permute.xlu1 %299  ;;  %v571_v25 = vsub.s32 0, %v570_v24  ;;  %v575_v27 = vsub.s32 1, %v570_v24  ;;  %v579_v28 = vsub.s32 2, %v570_v24 }
  0xbf   : > { %v302_v39 = vrot.slane %v300_v36, 4  ;;  %309 = vst.msk [vmem:[#allocation4 + $0x38] sm:$0xf] %vm239_vm2, %v300_v36  ;;  %v1052_v40 = vcombine.high %v271_v34, %v288_v35  ;;  %483 = vmatprep.subr.bf16.mxu0 %v1049_v37  ;;  %v1051_v48 = vcombine.low %v271_v34, %v288_v35 }
  0xc0   : > { %v332_v43 = vpop.permute.xlu0 %331  ;;  %v1195_v44 = vld [vmem:[#allocation4 + $0x8] ss:$12 sps:$4 sm:$0xff]   ;;  %484 = vmatpush1.bf16.msra.mxu0 %v1048_v38  ;;  %v572_v29 = vrot.slane %v567_v26, %v571_v25  ;;  %v576_v31 = vrot.slane %v567_v26, %v575_v27  ;;  %v580_v34 = vrot.slane %v567_v26, %v579_v28 }
  0xc1   : > { %485 = vmatprep.subr.bf16.mxu0 %v1052_v40  ;;  %v303_v46 = vsel %vm251_vm4, %v301_v41, %v302_v39  ;;  %1106 = vmatpush3.bf16.msra.mxu1 %v1195_v44  ;;  %v335_v56 = vrot.slane %v332_v43, 4 }
  0xc2   : > { %v317_v45 = vpop.permute.xlu1 %316  ;;  %1107 = vmatprep.subr.bf16.mxu1 %v1308_v6  ;;  %v1196_v51 = vld [vmem:[#allocation4 + $0x20] ss:$12 sps:$4 sm:$0xff]   ;;  %v305_v52 = vsel %vm304_vm8, %v298_v19, %v303_v46 }
  0xc3   : > { %v319_v47 = vrot.slane %v317_v45, 4  ;;  %326 = vst.msk [vmem:[#allocation4 + $0x44] sm:$0xf] %vm239_vm2, %v317_v45 }
  0xc4   : > { %v349_v50 = vpop.permute.xlu0 %348  ;;  %486 = vmatpush1.bf16.msra.mxu0 %v1051_v48 }
  0xc5   : > { %v320_v49 = vsel %vm251_vm4, %v318_v42, %v319_v47  ;;  %1108 = vmatpush3.bf16.msra.mxu1 %v1196_v51  ;;  %v352_v59 = vrot.slane %v349_v50, 4 }
  0xc6   : > { %v322_v53 = vsel %vm321_vm9, %v315_v33, %v320_v49  ;;  %v334_v54 = vpop.permute.xlu1 %333  ;;  %1109 = vmatprep.subr.bf16.mxu1 %v1308_v6 }
  0xc7   : > { %v336_v55 = vrot.slane %v334_v54, 4  ;;  %343 = vst.msk [vmem:[#allocation4 + $0x50] sm:$0xf] %vm239_vm2, %v334_v54  ;;  %v1055_v57 = vcombine.high %v305_v52, %v322_v53  ;;  %v1054_v58 = vcombine.low %v305_v52, %v322_v53 }
  0xc8   : > { %v366_v61 = vpop.permute.xlu0 %365 }
  0xc9   : > { %487 = vmatprep.subr.bf16.mxu0 %v1055_v57  ;;  %v337_v63 = vsel %vm251_vm4, %v335_v56, %v336_v55  ;;  %v369_v7 = vrot.slane %v366_v61, 4 }
  0xca   : > { %v351_v60 = vpop.permute.xlu1 %350  ;;  %v1197_v62 = vld [vmem:[#allocation4 + $0x38] ss:$12 sps:$4 sm:$0xff]   ;;  %488 = vmatpush1.bf16.msra.mxu0 %v1054_v58  ;;  %v339_v8 = vsel %vm338_vm10, %v332_v43, %v337_v63 }
  0xcb   : > { %v353_v4 = vrot.slane %v351_v60, 4  ;;  %360 = vst.msk [vmem:[#allocation4 + $0x5c] sm:$0xf] %vm239_vm2, %v351_v60  ;;  %1110 = vmatpush3.bf16.msra.mxu1 %v1197_v62 }
  0xcc   : > { %1111 = vmatprep.subr.bf16.mxu1 %v1308_v6 }
  0xcd   : > { %v354_v5 = vsel %vm251_vm4, %v352_v59, %v353_v4 }
  0xce   : > { %v356_v9 = vsel %vm355_vm11, %v349_v50, %v354_v5  ;;  %v368_v10 = vpop.permute.xlu1 %367 }
  0xcf   : > { %v370_v11 = vrot.slane %v368_v10, 4  ;;  %377 = vst.msk [vmem:[#allocation4 + $0x68] sm:$0xf] %vm239_vm2, %v368_v10  ;;  %v1058_v12 = vcombine.high %v339_v8, %v356_v9  ;;  %v1057_v13 = vcombine.low %v339_v8, %v356_v9 }
  0xd1   : > { %v371_v14 = vsel %vm251_vm4, %v369_v7, %v370_v11  ;;  %489 = vmatprep.subr.bf16.mxu0 %v1058_v12 }
  0xd2   : > { %v373_v15 = vsel %vm372_vm12, %v366_v61, %v371_v14  ;;  %v1198_v16 = vld [vmem:[#allocation4 + $0x50] ss:$12 sps:$4 sm:$0xff]   ;;  %490 = vmatpush1.bf16.msra.mxu0 %v1057_v13 }
  0xd3   : > { %v1061_v17 = vcombine.high %v373_v15, %v373_v15  ;;  %v1060_v18 = vcombine.low %v373_v15, %v373_v15  ;;  %1112 = vmatpush3.bf16.msra.mxu1 %v1198_v16 }
  0xd4   : > { %1113 = vmatprep.subr.bf16.mxu1 %v1308_v6 }
  0xd5   : > { %1063 = vmatprep.subr.msk.bf16.mxu0 %vm251_vm4, %v1061_v17  ;;  %v475_v19 = vsel %vm251_vm4, %v1060_v18, 0 }
  0xd6   : > { %v1199_v21 = vld [vmem:[#allocation4 + $0x68] ss:$0 sps:$4 sm:$0xff]   ;;  %492 = vmatpush1.bf16.msra.mxu0 %v475_v19 }
  0xd7   : > { %v481_v22 = vsel %vm251_vm4, %v1199_v21, 0 }
  0xd8   : > { %1114 = vmatpush3.bf16.msra.mxu1 %v481_v22 }
  0xd9   : > { %1064 = vmatmul.mubr.msk.bf16.vlgmr.msra.gmra.mrb[0].mxu0 %vm1657_vm13, %v378_v20  ;;  %1119 = vmatprep.subr.bf16.mxu1 %v1308_v6 }
  0xda   : > { %903 = vmatprep.mubr.bf16.mxu0 %v1304_v0 }
  0xdb   : > { %1116 = vmatmul.mubr.msk.bf16.vlgmr.msra.gmra.mrb[0].mxu1 %vm1657_vm13, %v378_v20  ;;  %vm616_vm13 = vcmask 576920  }
  0xdc   : > { %1129 = vmatprep.mubr.msk.bf16.mxu1 %vm1314_vm3, %v1308_v6  ;;  %vm612_vm3 = vmor %vm611_vm0, %vm610_vm15 }
 0x1ac   : > { %v517_v30 = vpop.f32.mrb[0].mxu0 }
 0x1ad   : > { %v564_v32 = vmax.f32 %v517_v30, 0.0  ;;  %v519_v33 = vpop.f32.mrb[1].mxu0 }
 0x1ae   : > { %v565_v35 = vmax.f32 %v519_v33, 0.0  ;;  %v521_v36 = vpop.f32.mrb[2].mxu0  ;;  %v558_v38 = vpop.f32.mrb[0].mxu1 }
 0x1af   : > { %v584_v37 = vmul.f32 %v572_v29, %v564_v32  ;;  %v522_v39 = vpop.f32.mrb[3].mxu0  ;;  %v566_v40 = vmax.f32 %v558_v38, 0.0  ;;  %v1117_v42 = vpop.f32.mrb[1].mxu1 }
 0x1b0   : > { %v585_v41 = vmul.f32 %v576_v31, %v565_v35  ;;  %v561_v43 = vpop.f32.mrb[2].mxu1 }
 0x1b1   : > { %v586_v44 = vmul.f32 %v580_v34, %v566_v40  ;;  %v1118_v45 = vpop.f32.mrb[3].mxu1 }
 0x1b2   : > { %v1091_v46 = vpack.c.bf16 %v585_v41, %v584_v37 }
 0x1b3   : > { %v1092_v47 = vpack.c.bf16 %v586_v44, %v586_v44 }
 0x1b4   : > { %600 = vrot.lane.b32.xlu0 %v1091_v46, %s1315_s5 }
 0x1b5   : > { %602 = vrot.lane.b32.xlu1 %v1092_v47, %s1315_s5 }
 0x226   : > { %v601_v48 = vpop.permute.xlu0 %600 }
 0x227   : > { %v604_v49 = vrot.slane %v601_v48, 4  ;;  %v603_v50 = vpop.permute.xlu1 %602 }
 0x229   : > { %v606_v51 = vsel %vm605_vm1, %v604_v49, %v601_v48  ;;  %v607_v52 = vsel %vm605_vm1, %v604_v49, %v603_v50 }
 0x22a   : > { %613 = vst.msk [vmem:[#allocation3] sm:$0xff] %vm612_vm3, %v606_v51 }
 0x22b   : > { %615 = vst.msk [vmem:[#allocation3 + $0x8] sm:$0xf] %vm614_vm14, %v607_v52 }
 0x22c   : > { %617 = vst.msk [vmem:[#allocation3 + $0x8] sm:$0xf] %vm616_vm13, %v1304_v0 }
 0x231   : > { %v618_v53 = vld [vmem:[#allocation3] sm:$0xff] }
 0x232   : > { %626 = vrot.lane.b32.xlu0 %v618_v53, %s1306_s7 }
 0x233   : > { %v619_v54 = vld [vmem:[#allocation3 + $0x8] sm:$0xf] }
 0x234   : > { %v623_v55 = vld [vmem:[#allocation3 + $0x8] sm:$0xf]  ;;  %621 = vst.msk [vmem:[#allocation4 + $0x8] sm:$0xf] %vm239_vm2, %v619_v54 }
 0x235   : > { %628 = vrot.lane.b32.xlu1 %v623_v55, %s1306_s7  ;;  %v639_v56 = vld [vmem:[#allocation3 + $0x8] sm:$0xf]  ;;  %s213_s7 = scalar_lea.vmem [#allocation8], %s1135_s9  ;;  %s957_s9 = scalar_lea.sflag [#allocation7], %s1441_s6 }
 0x236   : > { %642 = vrot.lane.b32.xlu0 %v618_v53, %s1305_s25  ;;  %v655_v57 = vld [vmem:[#allocation3 + $0x8] sm:$0xf] }
 0x237   : > { %v671_v0 = vld [vmem:[#allocation3 + $0x8] sm:$0xf] }
 0x238   : > { %v687_v58 = vld [vmem:[#allocation3 + $0x8] sm:$0xf] }
 0x239   : > { %644 = vrot.lane.b32.xlu1 %v639_v56, %s1305_s25  ;;  %v703_v59 = vld [vmem:[#allocation3 + $0x8] sm:$0xf]  ;;  %s1136_s25 = smul.u32 384, %s1363_s19 }
 0x23a   : > { %658 = vrot.lane.b32.xlu0 %v618_v53, %s1307_s10  ;;  %v719_v60 = vld [vmem:[#allocation3 + $0x8] sm:$0xf] }
 0x23b   : > { %v735_v61 = vld [vmem:[#allocation3 + $0x8] sm:$0xf]  ;;  %s1607_s19 = scalar_lea.hbm %s1655_s4, %s1136_s25 }
 0x23d   : > { %660 = vrot.lane.b32.xlu1 %v655_v57, %s1307_s10  ;;  %s971_s10 = sshll.u32 %s213_s7, 4  ;;  %s1609_s10 = int_to_ptr.vmem [resolvable:$true] %s971_s10 }
 0x23e   : > { %674 = vrot.lane.b32.xlu0 %v618_v53, %s1309_s11 }
 0x241   : > { %676 = vrot.lane.b32.xlu1 %v671_v0, %s1309_s11 }
 0x242   : > { %690 = vrot.lane.b32.xlu0 %v618_v53, %s1310_s13 }
 0x245   : > { %692 = vrot.lane.b32.xlu1 %v687_v58, %s1310_s13 }
 0x246   : > { %706 = vrot.lane.b32.xlu0 %v618_v53, %s1311_s14 }
 0x249   : > { %708 = vrot.lane.b32.xlu1 %v703_v59, %s1311_s14  ;;  %s1235_s14 = scalar_lea.vmem %s1609_s10, 384 }
 0x24a   : > { %722 = vrot.lane.b32.xlu0 %v618_v53, %s1312_s20  ;;  %p1236_p6 = scmp.ne.s32.totalorder %s1609_s10, %s1235_s14 }
 0x24c   : > { %p1237_p12 = pnand %p1236_p6, %p1666_p11 }
 0x24d   : > { %724 = vrot.lane.b32.xlu1 %v719_v60, %s1312_s20  ;;  %s1316_s20 = smov [#allocation8]  }
 0x24e   : > { %738 = vrot.lane.b32.xlu0 %v618_v53, %s1313_s22  ;;  %p1238_p13 = pneg %p1237_p12 }
 0x251   : > { %740 = vrot.lane.b32.xlu1 %v735_v61, %s1313_s22  ;;  %s1239_s22 = sshll.u32 %s1316_s20, 4  ;;  %s1240_s22 = int_to_ptr.vmem [resolvable:$false] %s1239_s22 }
 0x252   : > { %847 = vrot.lane.b32.xlu0 %v1452_v1, %s1309_s11  ;;  %s1241_s23 = scalar_lea.vmem %s1240_s22, 768  ;;  %p1242_p5 = scmp.lt.s32.totalorder %s1609_s10, %s1240_s22 }
 0x253   : > { %p1243_p10 = scmp.lt.s32.totalorder %s1241_s23, %s1235_s14 }
 0x255   : > { %849 = vrot.lane.b32.xlu1 %v1454_v2, %s1309_s11  ;;  %p1244_p2 = por %p1243_p10, %p1242_p5 }
 0x256   : > { %851 = vrot.lane.b32.xlu0 %v1456_v3, %s1309_s11 }
 0x257   : > { %p1245_p4 = pnand %p1244_p2, %p1238_p13 }
 0x2a4   : > { %v627_v62 = vpop.permute.xlu0 %626 }
 0x2a5   : > { %v630_v63 = vrot.slane %v627_v62, 4 }
 0x2a7   : > { %v629_v4 = vpop.permute.xlu1 %628 }
 0x2a8   : > { %v631_v5 = vrot.slane %v629_v4, 4  ;;  %637 = vst.msk [vmem:[#allocation4 + $0x14] sm:$0xf] %vm239_vm2, %v629_v4  ;;  %v643_v8 = vpop.permute.xlu0 %642 }
 0x2a9   : > { %v646_v10 = vrot.slane %v643_v8, 4 }
 0x2aa   : > { %v632_v7 = vsel %vm251_vm4, %v630_v63, %v631_v5  ;;  %v750_v63 = vld [vmem:[%s1654_s3] sm:$0xf] }
 0x2ab   : > { %v633_v9 = vsel %vm253_vm6, %v627_v62, %v632_v7  ;;  %v645_v11 = vpop.permute.xlu1 %644 }
 0x2ac   : > { %v647_v1 = vrot.slane %v645_v11, 4  ;;  %653 = vst.msk [vmem:[#allocation4 + $0x20] sm:$0xf] %vm239_vm2, %v645_v11  ;;  %v1068_v2 = vcombine.low %v618_v53, %v633_v9  ;;  %v1069_v12 = vcombine.high %v618_v53, %v633_v9  ;;  %v659_v13 = vpop.permute.xlu0 %658 }
 0x2ad   : > { %v662_v15 = vrot.slane %v659_v13, 4 }
 0x2ae   : > { %v648_v3 = vsel %vm251_vm4, %v646_v10, %v647_v1  ;;  %871 = vmatprep.subr.bf16.mxu0 %v1069_v12 }
 0x2af   : > { %v649_v14 = vsel %vm270_vm5, %v643_v8, %v648_v3  ;;  %v661_v16 = vpop.permute.xlu1 %660  ;;  %v1200_v17 = vld [vmem:[#allocation4 + $0x8] ss:$12 sps:$4 sm:$0xff]   ;;  %872 = vmatpush1.bf16.msra.mxu0 %v1068_v2 }
 0x2b0   : > { %v663_v18 = vrot.slane %v661_v16, 4  ;;  %669 = vst.msk [vmem:[#allocation4 + $0x2c] sm:$0xf] %vm239_vm2, %v661_v16  ;;  %1120 = vmatpush3.bf16.msra.mxu1 %v1200_v17  ;;  %v675_v20 = vpop.permute.xlu0 %674 }
 0x2b1   : > { %1121 = vmatprep.subr.bf16.mxu1 %v1308_v6  ;;  %v678_v22 = vrot.slane %v675_v20, 4 }
 0x2b2   : > { %v664_v19 = vsel %vm251_vm4, %v662_v15, %v663_v18 }
 0x2b3   : > { %v665_v21 = vsel %vm287_vm7, %v659_v13, %v664_v19  ;;  %v677_v23 = vpop.permute.xlu1 %676 }
 0x2b4   : > { %v679_v24 = vrot.slane %v677_v23, 4  ;;  %685 = vst.msk [vmem:[#allocation4 + $0x38] sm:$0xf] %vm239_vm2, %v677_v23  ;;  %v1071_v25 = vcombine.low %v649_v14, %v665_v21  ;;  %v1072_v26 = vcombine.high %v649_v14, %v665_v21  ;;  %v691_v28 = vpop.permute.xlu0 %690 }
 0x2b5   : > { %v694_v30 = vrot.slane %v691_v28, 4 }
 0x2b6   : > { %v680_v27 = vsel %vm251_vm4, %v678_v22, %v679_v24  ;;  %873 = vmatprep.subr.bf16.mxu0 %v1072_v26 }
 0x2b7   : > { %v681_v29 = vsel %vm304_vm8, %v675_v20, %v680_v27  ;;  %v693_v31 = vpop.permute.xlu1 %692  ;;  %v1201_v32 = vld [vmem:[#allocation4 + $0x20] ss:$12 sps:$4 sm:$0xff]   ;;  %874 = vmatpush1.bf16.msra.mxu0 %v1071_v25 }
 0x2b8   : > { %v695_v33 = vrot.slane %v693_v31, 4  ;;  %701 = vst.msk [vmem:[#allocation4 + $0x44] sm:$0xf] %vm239_vm2, %v693_v31  ;;  %1122 = vmatpush3.bf16.msra.mxu1 %v1201_v32  ;;  %v707_v35 = vpop.permute.xlu0 %706 }
 0x2b9   : > { %1123 = vmatprep.subr.bf16.mxu1 %v1308_v6  ;;  %v710_v37 = vrot.slane %v707_v35, 4 }
 0x2ba   : > { %v696_v34 = vsel %vm251_vm4, %v694_v30, %v695_v33 }
 0x2bb   : > { %v697_v36 = vsel %vm321_vm9, %v691_v28, %v696_v34  ;;  %v709_v38 = vpop.permute.xlu1 %708 }
 0x2bc   : > { %v711_v39 = vrot.slane %v709_v38, 4  ;;  %717 = vst.msk [vmem:[#allocation4 + $0x50] sm:$0xf] %vm239_vm2, %v709_v38  ;;  %v1074_v40 = vcombine.low %v681_v29, %v697_v36  ;;  %v1075_v41 = vcombine.high %v681_v29, %v697_v36  ;;  %v723_v43 = vpop.permute.xlu0 %722 }
 0x2bd   : > { %v726_v45 = vrot.slane %v723_v43, 4 }
 0x2be   : > { %v712_v42 = vsel %vm251_vm4, %v710_v37, %v711_v39  ;;  %875 = vmatprep.subr.bf16.mxu0 %v1075_v41 }
 0x2bf   : > { %v713_v44 = vsel %vm338_vm10, %v707_v35, %v712_v42  ;;  %v725_v46 = vpop.permute.xlu1 %724  ;;  %v1202_v47 = vld [vmem:[#allocation4 + $0x38] ss:$12 sps:$4 sm:$0xff]   ;;  %876 = vmatpush1.bf16.msra.mxu0 %v1074_v40 }
 0x2c0   : > { %v727_v48 = vrot.slane %v725_v46, 4  ;;  %733 = vst.msk [vmem:[#allocation4 + $0x5c] sm:$0xf] %vm239_vm2, %v725_v46  ;;  %1124 = vmatpush3.bf16.msra.mxu1 %v1202_v47  ;;  %v739_v50 = vpop.permute.xlu0 %738 }
 0x2c1   : > { %1125 = vmatprep.subr.bf16.mxu1 %v1308_v6  ;;  %v742_v52 = vrot.slane %v739_v50, 4 }
 0x2c2   : > { %v728_v49 = vsel %vm251_vm4, %v726_v45, %v727_v48 }
 0x2c3   : > { %v729_v51 = vsel %vm355_vm11, %v723_v43, %v728_v49  ;;  %v741_v53 = vpop.permute.xlu1 %740 }
 0x2c4   : > { %v743_v54 = vrot.slane %v741_v53, 4  ;;  %749 = vst.msk [vmem:[#allocation4 + $0x68] sm:$0xf] %vm239_vm2, %v741_v53  ;;  %v1077_v55 = vcombine.low %v713_v44, %v729_v51  ;;  %v1078_v56 = vcombine.high %v713_v44, %v729_v51  ;;  %vm1664_vm2 = vcmask 588800  }
 0x2c5   : > { %vm1665_vm5 = vmmov %vm1664_vm2 }
 0x2c6   : > { %v744_v57 = vsel %vm251_vm4, %v742_v52, %v743_v54  ;;  %877 = vmatprep.subr.bf16.mxu0 %v1078_v56 }
 0x2c7   : > { %v745_v0 = vsel %vm372_vm12, %v739_v50, %v744_v57  ;;  %v1203_v58 = vld [vmem:[#allocation4 + $0x50] ss:$12 sps:$4 sm:$0xff]   ;;  %878 = vmatpush1.bf16.msra.mxu0 %v1077_v55  ;;  %v850_v5 = vpop.permute.xlu1 %849 }
 0x2c8   : > { %v1081_v59 = vcombine.high %v745_v0, %v745_v0  ;;  %v1080_v60 = vcombine.low %v745_v0, %v745_v0  ;;  %1126 = vmatpush3.bf16.msra.mxu1 %v1203_v58 }
 0x2c9   : > { %1127 = vmatprep.subr.bf16.mxu1 %v1308_v6  ;;  %v848_v6 = vpop.permute.xlu0 %847 }
 0x2ca   : > { %1083 = vmatprep.subr.msk.bf16.mxu0 %vm251_vm4, %v1081_v59  ;;  %v863_v61 = vsel %vm251_vm4, %v1080_v60, 0  ;;  %v854_v8 = vsel %vm304_vm8, %v848_v6, %v850_v5 }
 0x2cb   : > { %v1204_v62 = vld [vmem:[#allocation4 + $0x68] ss:$0 sps:$4 sm:$0xff]   ;;  %880 = vmatpush1.bf16.msra.mxu0 %v863_v61 }
 0x2cc   : > { %v869_v4 = vsel %vm251_vm4, %v1204_v62, 0  ;;  %vm954_vm4 = vcmask 261120  }
 0x2cd   : > { %1128 = vmatpush3.bf16.msra.mxu1 %v869_v4  ;;  %v852_v7 = vpop.permute.xlu0 %851 }
 0x2ce   : > { %1084 = vmatmul.mubr.msk.bf16.vlgmr.msra.gmra.mrb[4].mxu0 %vm1664_vm2, %v750_v63  ;;  %v855_v9 = vsel %vm304_vm8, %v850_v5, %v852_v7 }
 0x2d0   : > { %1130 = vmatmul.mubr.msk.bf16.vlgmr.msra.gmra.mrb[4].mxu1 %vm1665_vm5, %v750_v63 }
 0x3a1   : > { %v905_v10 = vpop.f32.mrb[4].mxu0 }
 0x3a2   : > { %v906_v11 = vadd.f32 %v905_v10, %v854_v8  ;;  %v907_v1 = vpop.f32.mrb[5].mxu0 }
 0x3a3   : > { %v908_v2 = vadd.f32 %v907_v1, %v855_v9  ;;  %v909_v12 = vpop.f32.mrb[6].mxu0  ;;  %v946_v3 = vpop.f32.mrb[4].mxu1 }
 0x3a4   : > { %952 = vst [vmem:[%s213_s7] sm:$0xff] %v906_v11  ;;  %v910_v13 = vpop.f32.mrb[7].mxu0  ;;  %v1131_v14 = vpop.f32.mrb[5].mxu1  ;;  %v947_v15 = vadd.f32 %v946_v3, %v852_v7 }
 0x3a5   : > { %953 = vst [vmem:[%s213_s7 + $0x8] sm:$0xff] %v908_v2  ;;  %v949_v16 = vpop.f32.mrb[6].mxu1 }
 0x3a6   : > { %955 = vst.msk [vmem:[%s213_s7 + $0x10] sm:$0xff] %vm954_vm4, %v947_v15  ;;  %v1132_v17 = vpop.f32.mrb[7].mxu1 }
 0x3a7   : > { %1248 = shalt.err (!%p1245_p4)
}
 0x3a8   : > { %s1249_s6 = scalar_lea.hbm %s1607_s19, 384  ;;  %s1253_s30 = scalar_lea.hbm %s1655_s4, 768 }
 0x3a9   : > { %p1250_p7 = scmp.ne.s32.totalorder %s1607_s19, %s1249_s6  ;;  %p1254_p0 = scmp.lt.u32.totalorder %s1607_s19, %s1655_s4 }
 0x3aa   : > { %p1255_p1 = scmp.lt.u32.totalorder %s1253_s30, %s1249_s6  ;;  %p1257_p6 = scmp.lt.u32.totalorder %s1249_s6, %s1607_s19 }
 0x3ab   : > { %p1251_p8 = pnand %p1250_p7, %p1666_p11 }
 0x3ac   : > { %p1256_p3 = por %p1255_p1, %p1254_p0 }
 0x3ad   : > { %p1252_p9 = pneg %p1251_p8 }
 0x3ae   : > { %p1258_p12 = por %p1257_p6, %p1256_p3 }
 0x3b0   : > { %p1259_p13 = pnand %p1258_p12, %p1252_p9 }
 0x3b2   : > { %1262 = shalt.err (!%p1259_p13)
}
 0x3b3   : > { %1139 = dma.vmem_to_hbm [thread:$0]  (%p1666_p11), %s1609_s10, 384, %s1607_s19, %s957_s9  }
 0x3b4 PF: > { %s983_s8 = sand.u32 1, %s1289_s15   ;;  %p1667_p5 = scmp.ne.s32.totalorder %s1660_s27, 0 }
 0x3b5   : > { %p1668_p10 = scmp.ge.s32.totalorder %s1301_s18, 2  ;;  %s984_s25 = scalar_lea.sflag [#allocation7], %s983_s8 }
 0x3b7   : > { %p1146_p2 = pnand %p1668_p10, %p1667_p5 }
 0x3b9   : > { %1284 = dma.done.wait (!%p1146_p2), %s984_s25, 384  }
 0x3ba   : > { %1286 = vsyncadd (!%p1146_p2), %s984_s25, 4294966912  ;;  %p17_p4 = scmp.ge.s32.totalorder %s1367_s21, 4   ;;  %s1669_s15 = smov %s1293_s16 }
 0x3bb   : > { %s1670_s16 = smov %s1297_s17  ;;  %s1671_s17 = smov %s1379_s24 }
 0x3bc   : > { %s1672_s18 = smov %s1367_s21  ;;  %19 = sbr.rel (!%p17_p4) target bundleno = 5 (0x5), region = 81 }
 0x3c3   :  { %989 = vsyncpa [#allocation6], 1 }
 0x3c4   :  { %991 = vsyncpa [#allocation6 + $0x1], 1 }
 0x3c5   :  { %992 = vsyncpa [#allocation7], 1 }
 0x3c6   :  { %994 = vsyncpa [#allocation7 + $0x1], 1 }

</bundles_post_ra>
